<compile_context>
chip_gen: v7x
topology: tpu7x:2x2x1
jax: 0.10.0
libtpu: 0.0.40
codegen_flags: <defaults>
</compile_context>

<pallas_src>
import jax
import jax.numpy as jnp
from jax.experimental import pallas as pl
from jax.experimental.pallas import tpu as pltpu


_LANES = 128
_MAX_TILE_BYTES = 4 * 1024 * 1024          # 4 MiB per tile buffer
_VMEM_LIMIT_BYTES = 32 * 1024 * 1024       # safe on v5e / v6e / v7x


def _scale_x_kernel(t_ref, x_ref, o0_ref):
    """output0 tile = sqrt(1 - sqrt(t + (0.99 - t)*1e-4)) * x tile.

    t_ref  : SMEM [B] f32, scalar-prefetched diffusion times
    x_ref  : VMEM [1, TILE_R, 128] tile of x
    o0_ref : VMEM [1, TILE_R, 128] tile of output0
    """
    b = pl.program_id(0)
    t = t_ref[b]
    s = (0.99 - t) * 0.0001
    scale = jnp.sqrt(1.0 - jnp.sqrt(t + s))            # per-sample scalar splat
    o0_ref[...] = (scale * x_ref[...]).astype(o0_ref.dtype)


def _run_scale_kernel(x3, t_flat):
    """x3: [B, R, 128], t_flat: [B] f32.  Returns scale * x3 via Pallas."""
    B, R, _ = x3.shape
    itemsize = jnp.dtype(x3.dtype).itemsize

    # Biggest tile that fits the 4 MiB-per-buffer budget (multiple of 8 rows).
    max_tile_rows = max(8, (_MAX_TILE_BYTES // (_LANES * itemsize)) // 8 * 8)
    tile_r = min(R, max_tile_rows)

    # v7x megacore: guarantee >= 2 grid steps when B == 1 and R is one tile.
    if B == 1 and R > 8 and pl.cdiv(R, tile_r) < 2:
        half = pl.cdiv(R, 2)
        tile_r = min(tile_r, ((half + 7) // 8) * 8)

    grid = (B, pl.cdiv(R, tile_r))

    return pl.pallas_call(
        _scale_x_kernel,
        out_shape=jax.ShapeDtypeStruct((B, R, _LANES), x3.dtype),
        grid_spec=pltpu.PrefetchScalarGridSpec(
            num_scalar_prefetch=1,
            grid=grid,
            in_specs=[
                pl.BlockSpec((1, tile_r, _LANES), lambda b, j, t_sm: (b, j, 0)),
            ],
            out_specs=pl.BlockSpec((1, tile_r, _LANES),
                                   lambda b, j, t_sm: (b, j, 0)),
        ),
        compiler_params=pltpu.CompilerParams(
            dimension_semantics=("parallel", "parallel"),
            vmem_limit_bytes=_VMEM_LIMIT_BYTES,
        ),
        cost_estimate=pl.CostEstimate(
            flops=B * R * _LANES,
            transcendentals=0,
            bytes_accessed=2 * B * R * _LANES * itemsize + B * 4,
        ),
    )(t_flat, x3)


def sqrt_forward(x, t):
    """x: [B, C, H, W], t: [B, 1, 1, 1].

    Returns (output0, output1, output3) with torch-equivalent shapes:
      output0: [B, C, H, W], output1: [B, 1, 1, 1], output3: [B, 1, 1, 1].
    """
    B, C, H, W = x.shape
    D = C * H * W

    # ---- tiny per-sample outputs (B scalars each): plain JAX in the wrapper --
    s = (0.99 - t) * 0.0001
    root = jnp.sqrt(t + s)
    output3 = jnp.sqrt(1.0 - root)            # [B,1,1,1]
    output1 = jnp.sqrt(root)                  # [B,1,1,1]
    # NOTE: 1 - sqrt(t+s) < 0 (=> NaN) if t >= ~1.0; this matches the torch ref.

    # ---- heavy elementwise stream through Pallas ----------------------------
    t_flat = t.reshape(B).astype(jnp.float32)
    x_flat = x.reshape(B, D)

    D_main = (D // _LANES) * _LANES           # 128-aligned prefix
    R = D_main // _LANES

    if R == 0:
        # Degenerate tiny case: no 128-aligned prefix; plain JAX.
        output0 = (output3.astype(x.dtype) * x)
        return output0, output1, output3

    x3 = x_flat[:, :D_main].reshape(B, R, _LANES)   # free view when D_main == D
    o0_main = _run_scale_kernel(x3, t_flat)

    if D_main == D:
        output0 = o0_main.reshape(B, C, H, W)
    else:
        # Ragged tail (< 128 elems/sample): tiny plain-JAX multiply, then join.
        tail = x_flat[:, D_main:] * output3.reshape(B, 1).astype(x.dtype)
        output0 = jnp.concatenate(
            [o0_main.reshape(B, D_main), tail.astype(o0_main.dtype)], axis=1
        ).reshape(B, C, H, W)

    return output0, output1, output3


if __name__ == "__main__":
    key = jax.random.PRNGKey(0)
    kx, kt = jax.random.split(key)

    B, C, H, W = 2, 4, 16, 16
    x = jax.random.normal(kx, (B, C, H, W), dtype=jnp.float32)
    # t in (0, 1) like a diffusion time
    t = jax.random.uniform(kt, (B, 1, 1, 1), dtype=jnp.float32,
                           minval=0.01, maxval=0.95)

    out0, out1, out3 = sqrt_forward(x, t)
    jax.block_until_ready((out0, out1, out3))

    # Pure-JAX reference check (mirrors the torch module)
    s_ref = (0.99 - t) * 0.0001
    o3_ref = jnp.sqrt(1.0 - jnp.sqrt(t + s_ref))
    o0_ref = o3_ref * x
    o1_ref = jnp.sqrt(jnp.sqrt(t + s_ref))

    assert out0.shape == (B, C, H, W)
    assert out1.shape == (B, 1, 1, 1)
    assert out3.shape == (B, 1, 1, 1)
    assert jnp.allclose(out0, o0_ref, atol=1e-6, rtol=1e-6)
    assert jnp.allclose(out1, o1_ref, atol=1e-6, rtol=1e-6)
    assert jnp.allclose(out3, o3_ref, atol=1e-6, rtol=1e-6)

    print("KERNEL_OK")
</pallas_src>

<mosaic_0001>
module attributes {stable_mosaic.version = 11 : i64} {
  func.func @_scale_x_kernel(%arg0: i32, %arg1: i32, %arg2: memref<2xf32, #tpu.memory_space<smem>>, %arg3: memref<1x8x128xf32, #tpu.memory_space<vmem>>, %arg4: memref<1x8x128xf32, #tpu.memory_space<vmem>>) attributes {dimension_semantics = [#tpu.dimension_semantics<parallel>, #tpu.dimension_semantics<parallel>], iteration_bounds = array<i64: 2, 1>, scalar_prefetch = 1 : i64, scratch_operands = 0 : i64, tpu.core_type = #tpu.core_type<tc>, window_params = [{transform_indices = @transform_0, window_bounds = array<i64: 1, 8, 128>}, {transform_indices = @transform_1, window_bounds = array<i64: 1, 8, 128>}]} {
    %0 = arith.index_cast %arg0 : i32 to index
    %1 = memref.load %arg2[%0] : memref<2xf32, #tpu.memory_space<smem>>
    %cst = arith.constant 9.900000e-01 : f32
    %2 = arith.subf %cst, %1 : f32
    %cst_0 = arith.constant 9.99999974E-5 : f32
    %3 = arith.mulf %2, %cst_0 : f32
    %4 = arith.addf %1, %3 : f32
    %5 = math.sqrt %4 : f32
    %cst_1 = arith.constant 1.000000e+00 : f32
    %6 = arith.subf %cst_1, %5 : f32
    %7 = math.sqrt %6 : f32
    %c0 = arith.constant 0 : index
    %c0_2 = arith.constant 0 : index
    %c0_3 = arith.constant 0 : index
    %8 = vector.load %arg3[%c0, %c0_2, %c0_3] : memref<1x8x128xf32, #tpu.memory_space<vmem>>, vector<1x8x128xf32>
    %9 = vector.broadcast %7 : f32 to vector<1x8x128xf32>
    %10 = arith.mulf %9, %8 : vector<1x8x128xf32>
    %c0_4 = arith.constant 0 : index
    %c0_5 = arith.constant 0 : index
    %c0_6 = arith.constant 0 : index
    %11 = vector.load %arg4[%c0_4, %c0_5, %c0_6] : memref<1x8x128xf32, #tpu.memory_space<vmem>>, vector<1x8x128xf32>
    tpu.vector_store %arg4[%c0_4, %c0_5, %c0_6], %10 {strides = array<i32>} : memref<1x8x128xf32, #tpu.memory_space<vmem>>, vector<1x8x128xf32>,
    return
  }
  func.func @transform_0(%arg0: i32, %arg1: i32, %arg2: memref<2xf32, #tpu.memory_space<smem>>) -> (i32, i32, i32) {
    %c0_i32 = arith.constant 0 : i32
    %c0_i32_0 = arith.constant 0 : i32
    return %arg0, %arg1, %c0_i32 : i32, i32, i32
  }
  func.func @transform_1(%arg0: i32, %arg1: i32, %arg2: memref<2xf32, #tpu.memory_space<smem>>) -> (i32, i32, i32) {
    %c0_i32 = arith.constant 0 : i32
    %c0_i32_0 = arith.constant 0 : i32
    return %arg0, %arg1, %c0_i32 : i32, i32, i32
  }
}

</mosaic_0001>

<bundles_post_ra>
// kernel: tpu_custom_call.1
= control target key start
LH: loop header
LB: loop body
LE: loop exit
PB: predicated region body
PF: predicated region fallthrough
CT: control target
= control target key end

     0   :  { %s693_s0 = inlined_call_operand.hbm [shape: f32[2], index: 0, kind: input, shape index: {}]   ;;  %s694_s1 = inlined_call_operand.hbm [shape: f32[2,8,128], index: 1, kind: input, shape index: {}]   ;;  %s695_s2 = inlined_call_operand.hbm [shape: f32[2,8,128], index: 2, kind: output, shape index: {}]  }
   0x1   :  { %s360_s11 = scalar_lea.hbm %s693_s0, 16 }
   0x2   :  { %p361_p0 = scmp.ne.s32.totalorder %s693_s0, %s360_s11  ;;  %p364_p1 = scmp.lt.u32.totalorder %s360_s11, %s693_s0 }
   0x4   :  { %p366_p2 = pnand %p364_p1, %p361_p0 }
   0x6   :  { %369 = shalt.err (!%p366_p2)  }
   0x7   :  { %s486_s16 = smov [#allocation3]  }
   0x8   :  { %8 = dma.hbm_to_smem %s693_s0, 16, %s486_s16, [#allocation2] }
   0x9   :  { %452 = dma.done.wait [#allocation2], 16 }
   0xa   :  { %453 = vsyncadd [#allocation2], 4294967280 }
   0xb   :  { %10 = sfence }
   0xc   :  { %11 = vsyncpa [#allocation5], 0 }
   0xd   :  { %13 = vsyncpa [#allocation5 + $0x1], 0 }
   0xe   :  { %14 = vsyncpa [#allocation6], 0 }
   0xf   :  { %16 = vsyncpa [#allocation6 + $0x1], 0  ;;  %s516_s19 = smov 0   ;;  %s518_s20 = smov 0  }
  0x10   :  { %s520_s21 = smov 0   ;;  %s522_s22 = smov 0  }
  0x11   :  { %s524_s23 = smov 0   ;;  %s526_s24 = smov 0  }
  0x12 LB: > { %s276_s0 = sadd.s32 4294967295, %s484_s24   ;;  %s277_s25 = sadd.s32 4294967294, %s484_s24   ;;  %s484_s24 = sphi %s526_s24, %s22_s24   ;;  %s480_s23 = sphi %s524_s23, %s711_s23   ;;  %s476_s22 = sphi %s522_s22, %s710_s22   ;;  %s472_s21 = sphi %s520_s21, %s709_s21   ;;  %s468_s20 = sphi %s518_s20, %s708_s20   ;;  %s464_s19 = sphi %s516_s19, %s707_s19  }
  0x13   : > { %s34_s26 = sadd.s32 1, %s480_s23  ;;  %s43_s27 = sadd.s32 1, %s472_s21 }
  0x14   : > { %p36_p3 = scmp.ge.s32.totalorder %s34_s26, 2  ;;  %p50_p4 = scmp.ne.s32.totalorder %s472_s21, %s468_s20 }
  0x15   : > { %p51_p5 = scmp.eq.s32.totalorder %s484_s24, 0  ;;  %p56_p6 = scmp.ne.s32.totalorder %s468_s20, %s464_s19 }
  0x16   : > { %s713_s26 = smov (%p36_p3, %s34_s26), 0  ;;  %p57_p8 = scmp.eq.s32.totalorder %s276_s0, 0 }
  0x17   : > { %p557_p7 = por %p51_p5, %p50_p4  ;;  %s38_s29 = ssub.s32 %s480_s23, %s713_s26 }
  0x18   : > { %p82_p9 = scmp.eq.s32.totalorder %s276_s0, 1  ;;  %p41_p10 = scmp.eq.s32.totalorder %s38_s29, 0 }
  0x19   : > { %p563_p11 = por %p57_p8, %p56_p6  ;;  %p88_p13 = scmp.eq.s32.totalorder %s277_s25, 1 }
  0x1a   : > { %p567_p12 = por %p82_p9, %p50_p4  ;;  %p305_p2 = scmp.lt.s32.totalorder %s484_s24, 2 }
  0x1b   : > { %s572_s4 = scalar_select %p41_p10, %s472_s21, %s43_s27  }
  0x1c   : > { %s699_s3 = scalar_select %p567_p12, 1, 0 }
  0x1d   : > { %p574_p0 = por %p88_p13, %p56_p6  ;;  %s108_s6 = sand.u32 1, %s472_s21  }
  0x1e   : > { %s280_s7 = sshll.u32 %s108_s6, 3  ;;  %s281_s8 = sshll.u32 %s480_s23, 7 }
  0x1f   : > { %s700_s5 = scalar_select %p574_p0, 1, 0 }
  0x20   : > { %s585_s11 = scalar_lea.hbm %s694_s1, %s281_s8  ;;  %s112_s12 = scalar_lea.vmem [#allocation4], %s280_s7 }
  0x21   : > { %s120_s13 = sshll.u32 %s112_s12, 4  ;;  %p591_p3 = pnand %p305_p2, %p557_p7  ;;  %s587_s13 = int_to_ptr.vmem [resolvable:$true] %s120_s13 }
  0x22   : > { %s109_s15 = scalar_lea.sflag [#allocation5], %s108_s6  ;;  %s370_s16 = scalar_lea.hbm %s585_s11, 128 }
  0x23   : > { %p371_p6 = scmp.ne.s32.totalorder %s585_s11, %s370_s16  ;;  %p372_p8 = pneg %p591_p3 }
  0x24   : > { %s375_s0 = scalar_lea.hbm %s694_s1, 256  ;;  %p376_p7 = scmp.lt.u32.totalorder %s585_s11, %s694_s1 }
  0x25   : > { %p373_p9 = pnand %p372_p8, %p371_p6  ;;  %p377_p13 = scmp.lt.u32.totalorder %s375_s0, %s370_s16 }
  0x26   : > { %p379_p1 = scmp.lt.u32.totalorder %s370_s16, %s585_s11 }
  0x27   : > { %p374_p10 = pneg %p373_p9  ;;  %p378_p2 = por %p377_p13, %p376_p7 }
  0x29   : > { %p380_p4 = por %p379_p1, %p378_p2 }
  0x2b   : > { %p381_p5 = pnand %p380_p4, %p374_p10 }
  0x2d   : > { %384 = shalt.err (!%p381_p5)
}
  0x2e   : > { %s385_s28 = scalar_lea.vmem %s587_s13, 128  ;;  %s487_s29 = smov [#allocation4]  }
  0x2f   : > { %p386_p6 = scmp.ne.s32.totalorder %s587_s13, %s385_s28  ;;  %s390_s6 = sshll.u32 %s487_s29, 4  ;;  %s391_s6 = int_to_ptr.vmem [resolvable:$false] %s390_s6 }
  0x30   : > { %s392_s7 = scalar_lea.vmem %s391_s6, 256  ;;  %p393_p12 = scmp.lt.s32.totalorder %s587_s13, %s391_s6 }
  0x31   : > { %p388_p9 = pnand %p386_p6, %p372_p8  ;;  %p394_p7 = scmp.lt.s32.totalorder %s392_s7, %s385_s28 }
  0x33   : > { %p389_p0 = pneg %p388_p9  ;;  %p395_p13 = por %p394_p7, %p393_p12 }
  0x35   : > { %p396_p1 = pnand %p395_p13, %p389_p0 }
  0x37   : > { %399 = shalt.err (!%p396_p1)
}
  0x38   : > { %300 = dma.hbm_to_vmem [thread:$0]  (!%p591_p3), %s585_s11, 128, %s587_s13, %s109_s15  }
  0x39   : > { %p702_p4 = scmp.lt.s32.totalorder %s484_s24, 3  ;;  %p703_p5 = scmp.ge.s32.totalorder %s484_s24, 1 }
  0x3b   : > { %p126_p8 = pnand %p703_p5, %p702_p4 }
  0x3c   : > { %s627_s8 = sand.u32 (!%p126_p8), 1, %s468_s20  }
  0x3d   : > { %129 = sbr.rel (%p126_p8) target bundleno = 232 (0xe8), region = 24  ;;  %s283_s9 = sshll.u32 (!%p126_p8), %s627_s8, 3 }
  0x3e   : > { %s132_s10 = scalar_lea.sflag (!%p126_p8), [#allocation5], %s627_s8  ;;  %s135_s12 = scalar_lea.vmem (!%p126_p8), [#allocation4], %s283_s9 }
  0x44   : > { %455 = dma.done.wait (%p563_p11), %s132_s10, 128  }
  0x45   : > { %457 = vsyncadd (%p563_p11), %s132_s10, 4294967168  ;;  %s154_s11 = sld [smem:[#allocation3 + %s476_s22]]  ;;  %v177_v12 = vld [vmem:[%s135_s12] sm:$0xff]  ;;  %s286_s17 = sshll.u32 %s476_s22, 7 }
  0x46   : > { %s153_s18 = scalar_lea.vmem [#allocation7], %s283_s9  ;;  %s644_s29 = scalar_lea.hbm %s695_s2, %s286_s17 }
  0x47   : > { %s196_s0 = sshll.u32 %s153_s18, 4  ;;  %s182_s6 = scalar_lea.sflag [#allocation6], %s627_s8  ;;  %s646_s0 = int_to_ptr.vmem [resolvable:$true] %s196_s0 }
  0x48   : > { %s400_s7 = scalar_lea.vmem %s646_s0, 128  ;;  %p704_p12 = scmp.ne.s32.totalorder %s699_s3, 0 }
  0x49   : > { %p401_p11 = scmp.ne.s32.totalorder %s646_s0, %s400_s7  ;;  %s488_s22 = smov [#allocation7]  }
  0x4a   : > { %s404_s9 = sshll.u32 %s488_s22, 4  ;;  %s405_s9 = int_to_ptr.vmem [resolvable:$false] %s404_s9 }
  0x4b   : > { %s155_s13 = ssub.f32 0.99, %s154_s11  ;;  %p402_p0 = pnand %p401_p11, %p704_p12 }
  0x4c   : > { %s406_s10 = scalar_lea.vmem %s405_s9, 256  ;;  %p407_p10 = scmp.lt.s32.totalorder %s646_s0, %s405_s9 }
  0x4d   : > { %s156_s14 = smul.f32 0.0001, %s155_s13  ;;  %p403_p3 = pneg %p402_p0 }
  0x4e   : > { %p408_p2 = scmp.lt.s32.totalorder %s406_s10, %s400_s7 }
  0x4f   : > { %s157_s15 = sadd.f32 %s156_s14, %s154_s11 }
  0x50   : > { %p409_p6 = por %p408_p2, %p407_p10 }
  0x51   : > { %v158_v0 = vstv %s157_s15 }
  0x52   : > { %356 = vrsqrt.f32 %v158_v0  ;;  %vm161_vm0 = vcmp.eq.f32.partialorder %v158_v0, inf  ;;  %v164_v2 = vand.u32 2147483648, %v158_v0  ;;  %vm163_vm1 = vcmp.eq.f32.partialorder %v158_v0, 0.0  ;;  %p410_p9 = pnand %p409_p6, %p403_p3 }
  0x5c   : > { %v357_v1 = vpop.eup %356 }
  0x5d   : > { %v160_v3 = vmul.f32 %v357_v1, %v158_v0 }
  0x5f   : > { %v162_v4 = vsel %vm161_vm0, %v158_v0, %v160_v3 }
  0x60   : > { %v165_v5 = vsel %vm163_vm1, %v164_v2, %v162_v4 }
  0x61   : > { %289 = vpush %v165_v5 }
  0x92   : > { %s290_s16 = spop %289 }
  0x93   : > { %s167_s30 = ssub.f32 1.0, %s290_s16 }
  0x95   : > { %v168_v6 = vstv %s167_s30 }
  0x96   : > { %358 = vrsqrt.f32 %v168_v6  ;;  %vm171_vm2 = vcmp.eq.f32.partialorder %v168_v6, inf  ;;  %v174_v9 = vand.u32 2147483648, %v168_v6  ;;  %vm173_vm3 = vcmp.eq.f32.partialorder %v168_v6, 0.0 }
  0xa0   : > { %v359_v7 = vpop.eup %358 }
  0xa1   : > { %v170_v8 = vmul.f32 %v359_v7, %v168_v6 }
  0xa3   : > { %v172_v10 = vsel %vm171_vm2, %v168_v6, %v170_v8 }
  0xa4   : > { %v175_v11 = vsel %vm173_vm3, %v174_v9, %v172_v10 }
  0xa5   : > { %291 = vpush %v175_v11 }
  0xd6   : > { %s292_s25 = spop %291 }
  0xd7   : > { %v178_v13 = vstv %s292_s25 }
  0xd8   : > { %v179_v14 = vmul.f32 %v178_v13, %v177_v12 }
  0xda   : > { %180 = vst [vmem:[%s153_s18] sm:$0xff] %v179_v14 }
  0xdb   : > { %413 = shalt.err (!%p410_p9)
}
  0xdc   : > { %s414_s8 = scalar_lea.hbm %s644_s29, 128  ;;  %s418_s13 = scalar_lea.hbm %s695_s2, 256 }
  0xdd   : > { %p415_p7 = scmp.ne.s32.totalorder %s644_s29, %s414_s8  ;;  %p419_p4 = scmp.lt.u32.totalorder %s644_s29, %s695_s2 }
  0xde   : > { %p420_p5 = scmp.lt.u32.totalorder %s418_s13, %s414_s8  ;;  %p422_p11 = scmp.lt.u32.totalorder %s414_s8, %s644_s29 }
  0xdf   : > { %p416_p13 = pnand %p415_p7, %p704_p12 }
  0xe0   : > { %p421_p8 = por %p420_p5, %p419_p4 }
  0xe1   : > { %p417_p1 = pneg %p416_p13 }
  0xe2   : > { %p423_p0 = por %p422_p11, %p421_p8 }
  0xe4   : > { %p424_p3 = pnand %p423_p0, %p417_p1 }
  0xe6   : > { %427 = shalt.err (!%p424_p3)
}
  0xe7   : > { %295 = dma.vmem_to_hbm [thread:$0]  (%p704_p12), %s646_s0, 128, %s644_s29, %s182_s6  }
  0xe8 PF: > { %s208_s16 = sand.u32 1, %s464_s19   ;;  %p705_p10 = scmp.ne.s32.totalorder %s700_s5, 0 }
  0xe9   : > { %p706_p2 = scmp.ge.s32.totalorder %s484_s24, 2  ;;  %s209_s30 = scalar_lea.sflag [#allocation6], %s208_s16 }
  0xeb   : > { %p302_p6 = pnand %p706_p2, %p705_p10 }
  0xed   : > { %459 = dma.done.wait (!%p302_p6), %s209_s30, 128  }
  0xee   : > { %461 = vsyncadd (!%p302_p6), %s209_s30, 4294967168  ;;  %s22_s24 = sadd.s32 1, %s484_s24   ;;  %s707_s19 = smov %s468_s20 }
  0xef   : > { %p19_p9 = scmp.ge.s32.totalorder %s22_s24, 4   ;;  %s708_s20 = smov %s472_s21 }
  0xf0   : > { %s709_s21 = smov %s572_s4  ;;  %s710_s22 = smov %s480_s23 }
  0xf1   : > { %s711_s23 = smov %s713_s26  ;;  %21 = sbr.rel (!%p19_p9) target bundleno = 18 (0x12), region = 69 }
  0xf8   :  { %214 = vsyncpa [#allocation5], 1 }
  0xf9   :  { %216 = vsyncpa [#allocation5 + $0x1], 1 }
  0xfa   :  { %217 = vsyncpa [#allocation6], 1 }
  0xfb   :  { %219 = vsyncpa [#allocation6 + $0x1], 1 }

</bundles_post_ra>
